<compile_context>
chip_gen: v7x
topology: tpu7x:2x2x1
jax: 0.10.0
libtpu: 0.0.40
codegen_flags: <defaults>
</compile_context>

<pallas_src>
import functools

import jax
import jax.numpy as jnp
from jax.experimental import pallas as pl
from jax.experimental.pallas import tpu as pltpu


_LANE = 128        # vreg lane width
_SUBLANE = 16      # bf16 sublane packing (multiple of the f32 sublane of 8)
_MIB = 1024 * 1024


def _round_up(v, m):
    return (v + m - 1) // m * m


def _tpu_caps():
    """(physical VMEM bytes, dual-TensorCore chip?) with conservative fallbacks."""
    vmem_cap = 64 * _MIB            # conservative default (v7x per-TC VMEM)
    dual_core = False
    try:
        info = pltpu.get_tpu_info()
        cap = int(getattr(info, "vmem_capacity_bytes", vmem_cap))
        if cap >= 48 * _MIB:        # ignore obviously bogus readings
            vmem_cap = cap
        for attr in ("num_cores", "core_count", "tensorcore_count", "num_tensorcores"):
            v = getattr(info, attr, None)
            if v is not None:
                dual_core = int(v) >= 2
                break
    except Exception:
        pass
    try:
        kind = jax.devices()[0].device_kind.lower()
        if "v7" in kind:            # v7x: 2 TensorCores per chip
            dual_core = True
    except Exception:
        pass
    return vmem_cap, dual_core


def _vmem_bytes(block_b, in_dim, hid_p, out_p, out_dim):
    """Approximate VMEM working set: Buffered(1) resident weights/biases,
    double-buffered x/out tiles, live f32 hidden activations."""
    bf16, f32 = 2, 4
    weights = (in_dim * hid_p + hid_p * hid_p + hid_p * out_p) * bf16
    biases = (2 * hid_p + out_dim) * f32
    resident = weights + biases                    # single copy (Buffered(1))
    x_tiles = 2 * block_b * in_dim * bf16          # double-buffered input tiles
    out_tiles = 2 * block_b * out_dim * f32        # double-buffered output tiles
    live = 2 * block_b * hid_p * f32               # f32 hidden activations
    return resident + x_tiles + out_tiles + live


def _pick_block_b(B, in_dim, hid_p, out_p, out_dim, *, budget, dual_core):
    cap = 2048                                     # big tiles amortize the ~600-cycle step cost
    if dual_core and B > 2 * _SUBLANE:
        # v7x (2 TCs/chip): an even number of balanced tiles so both cores get
        # work; the halving loop below keeps the block count roughly even.
        blk = min(cap, _round_up(pl.cdiv(B, 2), _SUBLANE))
    else:
        # v5e/v6e (1 TC): the grid is a serial loop -> one big tile is fastest.
        blk = min(B, cap)
    while blk > _SUBLANE and _vmem_bytes(blk, in_dim, hid_p, out_p, out_dim) > budget:
        blk = _round_up(blk // 2, _SUBLANE)
    # TODO(synk): if the three bf16 weight matrices alone exceed the VMEM budget
    # (hid >= ~6k), switch to a K-tiled variant with an f32 accumulator and
    # pl.when(k==0) init instead of shrinking block_b further.
    return blk


def _pinned_spec(shape):
    """Weight/bias BlockSpec: whole array, index_map pinned to block (0,0) so
    it is DMA'd once and stays resident across the whole grid.  Buffered(1)
    drops the needless second pipeline buffer; fall back on older jax."""
    idx = lambda i: (0, 0)
    try:
        return pl.BlockSpec(shape, idx, pipeline_mode=pl.Buffered(1))
    except Exception:
        return pl.BlockSpec(shape, idx)


def _mlp_kernel(x_ref, w1_ref, b1_ref, w2_ref, b2_ref, w3_ref, b3_ref, o_ref):
    """Fused 3-layer MLP: (Linear+ReLU) x2 then Linear.

    x / w refs are bf16 (MXU-native); accumulation, bias add and ReLU are f32
    (keep the epilogue in f32 on the VPU -- v5e has no bf16 elementwise path).
    NOTE: on a partial last batch tile the out-of-bounds rows compute on
    garbage and are discarded by the masked writeback -- harmless by design.
    """
    x = x_ref[...]                                                     # bf16

    h = jnp.dot(x, w1_ref[...], preferred_element_type=jnp.float32)   # f32 acc
    h = jnp.maximum(h + b1_ref[...], 0.0)                             # f32 VPU

    h = jnp.dot(h.astype(w2_ref.dtype), w2_ref[...],
                preferred_element_type=jnp.float32)
    h = jnp.maximum(h + b2_ref[...], 0.0)

    out = jnp.dot(h.astype(w3_ref.dtype), w3_ref[...],
                  preferred_element_type=jnp.float32)                 # (blk, out_p)
    # Store only the real output columns (masked vst) -- no padded writeback.
    od = o_ref.shape[-1]
    o_ref[...] = (out[:, :od] + b3_ref[...]).astype(o_ref.dtype)


@functools.partial(jax.jit, static_argnames=("block_b",))
def mlp_forward(x, params, *, block_b=None):
    """Run MLPNetwork.forward on a [B, input_dim] batch.

    params = (w1, b1, w2, b2, w3, b3) with PyTorch Linear conventions:
      w_i: (out_features, in_features), b_i: (out_features,)
    """
    w1, b1, w2, b2, w3, b3 = params
    B, in_dim = x.shape
    hid = w1.shape[0]
    out_dim = w3.shape[0]

    # Pad feature dims of the matmul operands up to the 128-lane width so MXU
    # tiles / vregs are dense.  Zero padding is exact: padded hidden columns
    # stay 0 through bias(0)+ReLU and padded weight rows are 0.
    hid_p = _round_up(hid, _LANE)
    out_p = _round_up(out_dim, _LANE)

    def pad2(a, rows, cols):
        r, c = a.shape
        return jnp.pad(a, ((0, rows - r), (0, cols - c)))

    bf16 = jnp.bfloat16
    # Glue: transpose to (in, out), cast matmul operands to bf16, lane-pad.
    # TODO(synk): for hid >= ~2048 add a quantized-weight path (int8 on
    # v5e/v6e; fp8-e4m3 on v7x whose MXU has no integer mode).
    w1t = pad2(w1.T.astype(bf16), in_dim, hid_p)
    w2t = pad2(w2.T.astype(bf16), hid_p, hid_p)
    w3t = pad2(w3.T.astype(bf16), hid_p, out_p)
    b1r = pad2(b1.reshape(1, hid).astype(jnp.float32), 1, hid_p)
    b2r = pad2(b2.reshape(1, hid).astype(jnp.float32), 1, hid_p)
    b3r = b3.reshape(1, out_dim).astype(jnp.float32)      # stays at true width
    xb = x.astype(bf16)

    vmem_cap, dual_core = _tpu_caps()
    budget = (vmem_cap * 3) // 4                          # leave headroom
    if block_b is None:
        block_b = _pick_block_b(B, in_dim, hid_p, out_p, out_dim,
                                budget=budget, dual_core=dual_core)
    grid = (pl.cdiv(B, block_b),)

    # Weights/biases: full blocks, pinned to block 0 -> DMA'd once, resident,
    # single-buffered.  Only x / out are batch-tiled (and pipelined).
    in_specs = [
        pl.BlockSpec((block_b, in_dim), lambda i: (i, 0)),   # x (bf16, tiled)
        _pinned_spec((in_dim, hid_p)),                       # w1.T (bf16)
        _pinned_spec((1, hid_p)),                            # b1 (f32)
        _pinned_spec((hid_p, hid_p)),                        # w2.T (bf16)
        _pinned_spec((1, hid_p)),                            # b2 (f32)
        _pinned_spec((hid_p, out_p)),                        # w3.T (bf16)
        _pinned_spec((1, out_dim)),                          # b3 (f32)
    ]
    out_spec = pl.BlockSpec((block_b, out_dim), lambda i: (i, 0))

    # Scoped-VMEM limit: ALWAYS set (v5e's default is only 16 MiB), with
    # headroom over the estimate, capped below physical VMEM.
    est = _vmem_bytes(block_b, in_dim, hid_p, out_p, out_dim)
    vmem_limit = min(max(_round_up(int(est * 1.5), _MIB), 32 * _MIB),
                     _round_up(int(vmem_cap * 0.9), _MIB))

    flops = 2 * B * (in_dim * hid_p + hid_p * hid_p + hid_p * out_p)
    bytes_accessed = (
        B * in_dim * 2                                           # x (bf16)
        + (in_dim * hid_p + hid_p * hid_p + hid_p * out_p) * 2   # weights (bf16)
        + (2 * hid_p + out_dim) * 4                              # biases (f32)
        + B * out_dim * 4                                        # output (f32)
    )

    out = pl.pallas_call(
        _mlp_kernel,
        out_shape=jax.ShapeDtypeStruct((B, out_dim), jnp.float32),
        grid_spec=pltpu.PrefetchScalarGridSpec(
            num_scalar_prefetch=0,
            grid=grid,
            in_specs=in_specs,
            out_specs=out_spec,
        ),
        compiler_params=pltpu.CompilerParams(
            dimension_semantics=("parallel",),
            vmem_limit_bytes=vmem_limit,
        ),
        cost_estimate=pl.CostEstimate(
            flops=flops, transcendentals=0, bytes_accessed=bytes_accessed),
    )(xb, w1t, b1r, w2t, b2r, w3t, b3r)

    return out


def init_mlp_params(key, input_dim, output_dim, hidden_dim):
    """Deterministic init mimicking torch.nn.Linear defaults:
    uniform(-1/sqrt(fan_in), 1/sqrt(fan_in)) for both weight and bias."""
    keys = jax.random.split(key, 6)

    def linear(kw, kb, fan_in, fan_out):
        bound = 1.0 / jnp.sqrt(float(fan_in))
        w = jax.random.uniform(kw, (fan_out, fan_in), jnp.float32, -bound, bound)
        b = jax.random.uniform(kb, (fan_out,), jnp.float32, -bound, bound)
        return w, b

    w1, b1 = linear(keys[0], keys[1], input_dim, hidden_dim)
    w2, b2 = linear(keys[2], keys[3], hidden_dim, hidden_dim)
    w3, b3 = linear(keys[4], keys[5], hidden_dim, output_dim)
    return (w1, b1, w2, b2, w3, b3)


def mlp_forward_ref(x, params):
    """Pure-f32 JAX reference of MLPNetwork.forward (hidden_layer=2, dropout=0)."""
    w1, b1, w2, b2, w3, b3 = params
    h = jnp.maximum(x @ w1.T + b1, 0.0)
    h = jnp.maximum(h @ w2.T + b2, 0.0)
    return h @ w3.T + b3


def mlp_forward_bf16_ref(x, params):
    """Reference matching the kernel's mixed precision (bf16 operands, f32 acc)."""
    w1, b1, w2, b2, w3, b3 = params
    bf = jnp.bfloat16
    h = jnp.dot(x.astype(bf), w1.T.astype(bf), preferred_element_type=jnp.float32) + b1
    h = jnp.maximum(h, 0.0)
    h = jnp.dot(h.astype(bf), w2.T.astype(bf), preferred_element_type=jnp.float32) + b2
    h = jnp.maximum(h, 0.0)
    return jnp.dot(h.astype(bf), w3.T.astype(bf), preferred_element_type=jnp.float32) + b3


if __name__ == "__main__":
    # Small shapes consistent with the module's forward: states [batch, input_dim].
    batch, input_dim, hidden_dim, output_dim = 128, 32, 64, 10

    key = jax.random.PRNGKey(0)
    k_params, k_x = jax.random.split(key)
    params = init_mlp_params(k_params, input_dim, output_dim, hidden_dim)
    x = jax.random.normal(k_x, (batch, input_dim), jnp.float32)

    out = jax.block_until_ready(mlp_forward(x, params))

    ref_mixed = mlp_forward_bf16_ref(x, params)   # precision-matched reference
    ref_f32 = mlp_forward_ref(x, params)          # torch-equivalent f32 reference

    assert out.shape == (batch, output_dim)
    assert out.dtype == jnp.float32
    assert jnp.allclose(out, ref_mixed, atol=2e-3, rtol=2e-3), "mismatch vs bf16 reference"
    assert jnp.allclose(out, ref_f32, atol=5e-2, rtol=5e-2), "mismatch vs f32 reference"

    print("KERNEL_OK")
</pallas_src>

<mosaic_0001>
module attributes {stable_mosaic.version = 11 : i64} {
  func.func @_mlp_kernel(%arg0: i32, %arg1: memref<128x32xbf16, #tpu.memory_space<vmem>>, %arg2: memref<32x128xbf16, #tpu.memory_space<vmem>>, %arg3: memref<1x128xf32, #tpu.memory_space<vmem>>, %arg4: memref<128x128xbf16, #tpu.memory_space<vmem>>, %arg5: memref<1x128xf32, #tpu.memory_space<vmem>>, %arg6: memref<128x128xbf16, #tpu.memory_space<vmem>>, %arg7: memref<1x10xf32, #tpu.memory_space<vmem>>, %arg8: memref<128x10xf32, #tpu.memory_space<vmem>>) attributes {dimension_semantics = [#tpu.dimension_semantics<parallel>], iteration_bounds = array<i64: 1>, scalar_prefetch = 0 : i64, scratch_operands = 0 : i64, tpu.core_type = #tpu.core_type<tc>, window_params = [{transform_indices = @transform_0, window_bounds = array<i64: 128, 32>}, {pipeline_mode = #tpu.pipeline_mode<synchronous>, transform_indices = @transform_1, window_bounds = array<i64: 32, 128>}, {pipeline_mode = #tpu.pipeline_mode<synchronous>, transform_indices = @transform_2, window_bounds = array<i64: 1, 128>}, {pipeline_mode = #tpu.pipeline_mode<synchronous>, transform_indices = @transform_3, window_bounds = array<i64: 128, 128>}, {pipeline_mode = #tpu.pipeline_mode<synchronous>, transform_indices = @transform_4, window_bounds = array<i64: 1, 128>}, {pipeline_mode = #tpu.pipeline_mode<synchronous>, transform_indices = @transform_5, window_bounds = array<i64: 128, 128>}, {pipeline_mode = #tpu.pipeline_mode<synchronous>, transform_indices = @transform_6, window_bounds = array<i64: 1, 10>}, {transform_indices = @transform_7, window_bounds = array<i64: 128, 10>}]} {
    %c0 = arith.constant 0 : index
    %c0_0 = arith.constant 0 : index
    %0 = vector.load %arg1[%c0, %c0_0] : memref<128x32xbf16, #tpu.memory_space<vmem>>, vector<128x32xbf16>
    %c0_1 = arith.constant 0 : index
    %c0_2 = arith.constant 0 : index
    %1 = vector.load %arg2[%c0_1, %c0_2] : memref<32x128xbf16, #tpu.memory_space<vmem>>, vector<32x128xbf16>
    %cst = arith.constant dense<0.000000e+00> : vector<128x128xf32>
    %2 = tpu.matmul %0, %1, %cst {dimension_numbers = #tpu.dot_dimension_numbers<[1], [0], [0], [1], [0, 0, 1, 1], [], []>} : vector<128x32xbf16>, vector<32x128xbf16>, vector<128x128xf32> -> vector<128x128xf32>
    %c0_3 = arith.constant 0 : index
    %c0_4 = arith.constant 0 : index
    %3 = vector.load %arg3[%c0_3, %c0_4] : memref<1x128xf32, #tpu.memory_space<vmem>>, vector<1x128xf32>
    %4 = vector.broadcast %3 : vector<1x128xf32> to vector<128x128xf32>
    %5 = arith.addf %2, %4 : vector<128x128xf32>
    %cst_5 = arith.constant 0.000000e+00 : f32
    %6 = vector.broadcast %cst_5 : f32 to vector<128x128xf32>
    %7 = arith.maximumf %5, %6 : vector<128x128xf32>
    %8 = arith.truncf %7 : vector<128x128xf32> to vector<128x128xbf16>
    %c0_6 = arith.constant 0 : index
    %c0_7 = arith.constant 0 : index
    %9 = vector.load %arg4[%c0_6, %c0_7] : memref<128x128xbf16, #tpu.memory_space<vmem>>, vector<128x128xbf16>
    %cst_8 = arith.constant dense<0.000000e+00> : vector<128x128xf32>
    %10 = tpu.matmul %8, %9, %cst_8 {dimension_numbers = #tpu.dot_dimension_numbers<[1], [0], [0], [1], [0, 0, 1, 1], [], []>} : vector<128x128xbf16>, vector<128x128xbf16>, vector<128x128xf32> -> vector<128x128xf32>
    %c0_9 = arith.constant 0 : index
    %c0_10 = arith.constant 0 : index
    %11 = vector.load %arg5[%c0_9, %c0_10] : memref<1x128xf32, #tpu.memory_space<vmem>>, vector<1x128xf32>
    %12 = vector.broadcast %11 : vector<1x128xf32> to vector<128x128xf32>
    %13 = arith.addf %10, %12 : vector<128x128xf32>
    %cst_11 = arith.constant 0.000000e+00 : f32
    %14 = vector.broadcast %cst_11 : f32 to vector<128x128xf32>
    %15 = arith.maximumf %13, %14 : vector<128x128xf32>
    %16 = arith.truncf %15 : vector<128x128xf32> to vector<128x128xbf16>
    %c0_12 = arith.constant 0 : index
    %c0_13 = arith.constant 0 : index
    %17 = vector.load %arg6[%c0_12, %c0_13] : memref<128x128xbf16, #tpu.memory_space<vmem>>, vector<128x128xbf16>
    %cst_14 = arith.constant dense<0.000000e+00> : vector<128x128xf32>
    %18 = tpu.matmul %16, %17, %cst_14 {dimension_numbers = #tpu.dot_dimension_numbers<[1], [0], [0], [1], [0, 0, 1, 1], [], []>} : vector<128x128xbf16>, vector<128x128xbf16>, vector<128x128xf32> -> vector<128x128xf32>
    %19 = vector.extract_strided_slice %18 {offsets = [0, 0], sizes = [128, 10], strides = [1, 1]} : vector<128x128xf32> to vector<128x10xf32>
    %c0_15 = arith.constant 0 : index
    %c0_16 = arith.constant 0 : index
    %20 = vector.load %arg7[%c0_15, %c0_16] : memref<1x10xf32, #tpu.memory_space<vmem>>, vector<1x10xf32>
    %21 = vector.broadcast %20 : vector<1x10xf32> to vector<128x10xf32>
    %22 = arith.addf %19, %21 : vector<128x10xf32>
    %c0_17 = arith.constant 0 : index
    %c0_18 = arith.constant 0 : index
    %23 = vector.load %arg8[%c0_17, %c0_18] : memref<128x10xf32, #tpu.memory_space<vmem>>, vector<128x10xf32>
    tpu.vector_store %arg8[%c0_17, %c0_18], %22 {strides = array<i32>} : memref<128x10xf32, #tpu.memory_space<vmem>>, vector<128x10xf32>,
    return
  }
  func.func @transform_0(%arg0: i32) -> (i32, i32) {
    %c0_i32 = arith.constant 0 : i32
    %c0_i32_0 = arith.constant 0 : i32
    return %arg0, %c0_i32 : i32, i32
  }
  func.func @transform_1(%arg0: i32) -> (i32, i32) {
    %c0_i32 = arith.constant 0 : i32
    %c0_i32_0 = arith.constant 0 : i32
    %c0_i32_1 = arith.constant 0 : i32
    return %c0_i32, %c0_i32_0 : i32, i32
  }
  func.func @transform_2(%arg0: i32) -> (i32, i32) {
    %c0_i32 = arith.constant 0 : i32
    %c0_i32_0 = arith.constant 0 : i32
    %c0_i32_1 = arith.constant 0 : i32
    return %c0_i32, %c0_i32_0 : i32, i32
  }
  func.func @transform_3(%arg0: i32) -> (i32, i32) {
    %c0_i32 = arith.constant 0 : i32
    %c0_i32_0 = arith.constant 0 : i32
    %c0_i32_1 = arith.constant 0 : i32
    return %c0_i32, %c0_i32_0 : i32, i32
  }
  func.func @transform_4(%arg0: i32) -> (i32, i32) {
    %c0_i32 = arith.constant 0 : i32
    %c0_i32_0 = arith.constant 0 : i32
    %c0_i32_1 = arith.constant 0 : i32
    return %c0_i32, %c0_i32_0 : i32, i32
  }
  func.func @transform_5(%arg0: i32) -> (i32, i32) {
    %c0_i32 = arith.constant 0 : i32
    %c0_i32_0 = arith.constant 0 : i32
    %c0_i32_1 = arith.constant 0 : i32
    return %c0_i32, %c0_i32_0 : i32, i32
  }
  func.func @transform_6(%arg0: i32) -> (i32, i32) {
    %c0_i32 = arith.constant 0 : i32
    %c0_i32_0 = arith.constant 0 : i32
    %c0_i32_1 = arith.constant 0 : i32
    return %c0_i32, %c0_i32_0 : i32, i32
  }
  func.func @transform_7(%arg0: i32) -> (i32, i32) {
    %c0_i32 = arith.constant 0 : i32
    %c0_i32_0 = arith.constant 0 : i32
    return %arg0, %c0_i32 : i32, i32
  }
}

</mosaic_0001>

<bundles_post_ra>
// kernel: mlp_forward.1
= control target key start
LH: loop header
LB: loop body
LE: loop exit
PB: predicated region body
PF: predicated region fallthrough
CT: control target
= control target key end

     0   :  { %vm106_vm0 = vcmask 261120   ;;  %vm628_vm1 = vcmask 80896   ;;  %s1037_s1 = inlined_call_operand.vmem [shape: bf16[32,128], index: 1, kind: input, shape index: {}]   ;;  %s1038_s0 = inlined_call_operand.vmem [shape: bf16[128,32], index: 0, kind: input, shape index: {}]   ;;  %s1039_s3 = inlined_call_operand.vmem [shape: bf16[128,128], index: 3, kind: input, shape index: {}]   ;;  %s1040_s5 = inlined_call_operand.vmem [shape: bf16[128,128], index: 5, kind: input, shape index: {}]   ;;  %s1041_s2 = inlined_call_operand.vmem [shape: f32[1,128], index: 2, kind: input, shape index: {}]   ;;  %s1042_s4 = inlined_call_operand.vmem [shape: f32[1,128], index: 4, kind: input, shape index: {}]   ;;  %s1043_s6 = inlined_call_operand.vmem [shape: f32[1,10], index: 6, kind: input, shape index: {}]   ;;  %s1044_s7 = inlined_call_operand.vmem [shape: f32[128,10], index: 7, kind: output, shape index: {}]  }
   0x1   :  { %v812_v0 = vld [vmem:[%s1037_s1] sm:$0xff]   ;;  %v813_v1 = vld [vmem:[%s1037_s1 + $0x8] sm:$0xff]   ;;  %v816_v4 = vld [vmem:[%s1038_s0 + $0x10] sm:$0xff]  }
   0x2   :  { %728 = vmatprep.subr.bf16.mxu0 %v812_v0  ;;  %v814_v2 = vld [vmem:[%s1038_s0] sm:$0xff]   ;;  %v815_v3 = vld [vmem:[%s1038_s0 + $0x8] sm:$0xff]   ;;  %v817_v7 = vld [vmem:[%s1038_s0 + $0x18] sm:$0xff]  }
   0x3   :  { %729 = vmatpush3.bf16.msra.mxu0 %v812_v0  ;;  %732 = vmatprep.mubr.msk.bf16.mxu0 %vm106_vm0, %v814_v2  ;;  %v822_v5 = vld [vmem:[%s1039_s3] sm:$0xff]   ;;  %v823_v6 = vld [vmem:[%s1039_s3 + $0x8] sm:$0xff]   ;;  %v824_v8 = vld [vmem:[%s1039_s3 + $0x10] sm:$0xff]  }
   0x4   :  { %730 = vmatprep.subr.bf16.mxu0 %v813_v1  ;;  %748 = vmatprep.subr.bf16.mxu1 %v822_v5  ;;  %v818_v9 = vld [vmem:[%s1038_s0 + $0x20] sm:$0xff]   ;;  %v825_v10 = vld [vmem:[%s1039_s3 + $0x18] sm:$0xff]   ;;  %v819_v11 = vld [vmem:[%s1038_s0 + $0x28] sm:$0xff]  }
   0x5   :  { %749 = vmatpush3.bf16.msra.mxu1 %v822_v5  ;;  %v826_v12 = vld [vmem:[%s1039_s3 + $0x20] sm:$0xff]   ;;  %v820_v13 = vld [vmem:[%s1038_s0 + $0x30] sm:$0xff]   ;;  %v827_v14 = vld [vmem:[%s1039_s3 + $0x28] sm:$0xff]  }
   0x6   :  { %750 = vmatprep.subr.bf16.mxu1 %v823_v6  ;;  %v821_v15 = vld [vmem:[%s1038_s0 + $0x38] sm:$0xff]   ;;  %v828_v16 = vld [vmem:[%s1039_s3 + $0x30] sm:$0xff]   ;;  %v830_v18 = vld [vmem:[%s1040_s5] sm:$0xff]  }
   0x7   :  { %731 = vmatpush3.bf16.msra.mxu0 %v813_v1  ;;  %v829_v17 = vld [vmem:[%s1039_s3 + $0x38] sm:$0xff]   ;;  %v831_v19 = vld [vmem:[%s1040_s5 + $0x8] sm:$0xff]   ;;  %v832_v20 = vld [vmem:[%s1040_s5 + $0x10] sm:$0xff]  }
   0x8   :  { %780 = vmatprep.subr.bf16.mxu0 %v830_v18  ;;  %v833_v21 = vld [vmem:[%s1040_s5 + $0x18] sm:$0xff]   ;;  %v834_v22 = vld [vmem:[%s1040_s5 + $0x20] sm:$0xff]   ;;  %v835_v23 = vld [vmem:[%s1040_s5 + $0x28] sm:$0xff]  }
   0x9   :  { %751 = vmatpush3.bf16.msra.mxu1 %v823_v6  ;;  %v649_v24 = vld [vmem:[%s1041_s2] ss:$0 sm:$0xff] }
   0xa   :  { %733 = vmatmul.mubr.msk.bf16.vlgmr.msra.gmra.mrb[0].mxu0 %vm106_vm0, %v815_v3  ;;  %752 = vmatprep.subr.bf16.mxu1 %v824_v8 }
   0xb   :  { %736 = vmatprep.mubr.msk.bf16.mxu0 %vm106_vm0, %v816_v4  ;;  %781 = vmatpush3.bf16.msra.mxu0 %v830_v18  ;;  %v837_v18 = vld [vmem:[%s1040_s5 + $0x38] sm:$0xff]  }
   0xc   :  { %782 = vmatprep.subr.bf16.mxu0 %v831_v19 }
   0xd   :  { %753 = vmatpush3.bf16.msra.mxu1 %v824_v8 }
   0xe   :  { %754 = vmatprep.subr.bf16.mxu1 %v825_v10 }
   0xf   :  { %783 = vmatpush3.bf16.msra.mxu0 %v831_v19  ;;  %v668_v19 = vld [vmem:[%s1042_s4] ss:$0 sm:$0xff] }
  0x10   :  { %784 = vmatprep.subr.bf16.mxu0 %v832_v20 }
  0x11   :  { %755 = vmatpush3.bf16.msra.mxu1 %v825_v10 }
  0x12   :  { %737 = vmatmul.mubr.msk.bf16.gmra.mrb[4].mxu0 %vm106_vm0, %v817_v7  ;;  %756 = vmatprep.subr.bf16.mxu1 %v826_v12 }
  0x13   :  { %740 = vmatprep.mubr.msk.bf16.mxu0 %vm106_vm0, %v818_v9  ;;  %785 = vmatpush3.bf16.msra.mxu0 %v832_v20 }
  0x14   :  { %786 = vmatprep.subr.bf16.mxu0 %v833_v21 }
  0x15   :  { %757 = vmatpush3.bf16.msra.mxu1 %v826_v12 }
  0x16   :  { %758 = vmatprep.subr.bf16.mxu1 %v827_v14 }
  0x17   :  { %787 = vmatpush3.bf16.msra.mxu0 %v833_v21 }
  0x18   :  { %788 = vmatprep.subr.bf16.mxu0 %v834_v22 }
  0x19   :  { %759 = vmatpush3.bf16.msra.mxu1 %v827_v14 }
  0x1a   :  { %741 = vmatmul.mubr.msk.bf16.gmra.mrb[8].mxu0 %vm106_vm0, %v819_v11  ;;  %760 = vmatprep.subr.bf16.mxu1 %v828_v16 }
  0x1b   :  { %744 = vmatprep.mubr.msk.bf16.mxu0 %vm106_vm0, %v820_v13  ;;  %789 = vmatpush3.bf16.msra.mxu0 %v834_v22 }
  0x1c   :  { %790 = vmatprep.subr.bf16.mxu0 %v835_v23 }
  0x1d   :  { %761 = vmatpush3.bf16.msra.mxu1 %v828_v16 }
  0x1e   :  { %762 = vmatprep.subr.bf16.mxu1 %v829_v17 }
  0x1f   :  { %791 = vmatpush3.bf16.msra.mxu0 %v835_v23 }
  0x21   :  { %763 = vmatpush3.bf16.msra.mxu1 %v829_v17  ;;  %v836_v17 = vld [vmem:[%s1040_s5 + $0x30] sm:$0xff]  }
  0x22   :  { %745 = vmatmul.mubr.msk.bf16.gmra.mrb[12].mxu0 %vm106_vm0, %v821_v15  ;;  %792 = vmatprep.subr.bf16.mxu0 %v836_v17 }
  0x23   :  { %793 = vmatpush3.bf16.msra.mxu0 %v836_v17 }
  0x24   :  { %794 = vmatprep.subr.bf16.mxu0 %v837_v18 }
  0x27   :  { %795 = vmatpush3.bf16.msra.mxu0 %v837_v18 }
  0xdd   :  { %v734_v25 = vpop.f32.mrb[0].mxu0 }
  0xde   :  { %v174_v26 = vadd.f32 %v734_v25, %v649_v24  ;;  %v165_v27 = vpop.f32.mrb[1].mxu0 }
  0xdf   :  { %v166_v28 = vadd.f32 %v649_v24, %v165_v27  ;;  %v735_v29 = vpop.f32.mrb[2].mxu0 }
  0xe0   :  { %v177_v30 = vadd.f32 %v735_v29, %v649_v24  ;;  %v168_v31 = vpop.f32.mrb[3].mxu0  ;;  %v230_v33 = vmax.f32 %v174_v26, 0.0 }
  0xe1   :  { %v169_v32 = vadd.f32 %v649_v24, %v168_v31  ;;  %v228_v35 = vmax.f32 %v166_v28, 0.0 }
  0xe2   :  { %v231_v34 = vmax.f32 %v177_v30, 0.0 }
  0xe3   :  { %v229_v36 = vmax.f32 %v169_v32, 0.0 }
  0xe4   :  { %v245_v37 = vpack.c.bf16 %v231_v34, %v230_v33 }
  0xe5   :  { %v738_v38 = vpop.f32.mrb[4].mxu0  ;;  %v244_v39 = vpack.c.bf16 %v229_v36, %v228_v35 }
  0xe6   :  { %v190_v40 = vadd.f32 %v738_v38, %v649_v24  ;;  %v181_v41 = vpop.f32.mrb[5].mxu0 }
  0xe7   :  { %v182_v42 = vadd.f32 %v649_v24, %v181_v41  ;;  %v739_v43 = vpop.f32.mrb[6].mxu0  ;;  %764 = vmatprep.mubr.bf16.mxu1 %v244_v39 }
  0xe8   :  { %v193_v44 = vadd.f32 %v739_v43, %v649_v24  ;;  %v184_v45 = vpop.f32.mrb[7].mxu0  ;;  %765 = vmatmul.mubr.bf16.vlgmr.msra.gmra.mrb[0].mxu1 %v245_v37  ;;  %v234_v47 = vmax.f32 %v190_v40, 0.0 }
  0xe9   :  { %v185_v46 = vadd.f32 %v649_v24, %v184_v45  ;;  %v232_v49 = vmax.f32 %v182_v42, 0.0 }
  0xea   :  { %v235_v48 = vmax.f32 %v193_v44, 0.0 }
  0xeb   :  { %v233_v50 = vmax.f32 %v185_v46, 0.0 }
  0xec   :  { %v247_v51 = vpack.c.bf16 %v235_v48, %v234_v47 }
  0xed   :  { %v246_v52 = vpack.c.bf16 %v233_v50, %v232_v49  ;;  %v742_v53 = vpop.f32.mrb[8].mxu0 }
  0xee   :  { %v206_v54 = vadd.f32 %v742_v53, %v649_v24  ;;  %v197_v55 = vpop.f32.mrb[9].mxu0 }
  0xef   :  { %v198_v56 = vadd.f32 %v649_v24, %v197_v55  ;;  %v743_v57 = vpop.f32.mrb[10].mxu0  ;;  %768 = vmatprep.mubr.bf16.mxu1 %v246_v52 }
  0xf0   :  { %v209_v58 = vadd.f32 %v743_v57, %v649_v24  ;;  %v200_v59 = vpop.f32.mrb[11].mxu0  ;;  %769 = vmatmul.mubr.bf16.gmra.mrb[4].mxu1 %v247_v51  ;;  %v238_v61 = vmax.f32 %v206_v54, 0.0 }
  0xf1   :  { %v201_v60 = vadd.f32 %v649_v24, %v200_v59  ;;  %v236_v63 = vmax.f32 %v198_v56, 0.0 }
  0xf2   :  { %v239_v62 = vmax.f32 %v209_v58, 0.0 }
  0xf3   :  { %v237_v0 = vmax.f32 %v201_v60, 0.0 }
  0xf4   :  { %v249_v1 = vpack.c.bf16 %v239_v62, %v238_v61 }
  0xf5   :  { %v248_v2 = vpack.c.bf16 %v237_v0, %v236_v63  ;;  %v746_v3 = vpop.f32.mrb[12].mxu0 }
  0xf6   :  { %v222_v4 = vadd.f32 %v746_v3, %v649_v24  ;;  %v213_v5 = vpop.f32.mrb[13].mxu0 }
  0xf7   :  { %v214_v6 = vadd.f32 %v649_v24, %v213_v5  ;;  %v747_v7 = vpop.f32.mrb[14].mxu0  ;;  %772 = vmatprep.mubr.bf16.mxu1 %v248_v2 }
  0xf8   :  { %v225_v8 = vadd.f32 %v747_v7, %v649_v24  ;;  %v216_v9 = vpop.f32.mrb[15].mxu0  ;;  %773 = vmatmul.mubr.bf16.gmra.mrb[8].mxu1 %v249_v1  ;;  %v242_v11 = vmax.f32 %v222_v4, 0.0 }
  0xf9   :  { %v217_v10 = vadd.f32 %v649_v24, %v216_v9  ;;  %v240_v13 = vmax.f32 %v214_v6, 0.0 }
  0xfa   :  { %v243_v12 = vmax.f32 %v225_v8, 0.0 }
  0xfb   :  { %v241_v14 = vmax.f32 %v217_v10, 0.0 }
  0xfc   :  { %v251_v15 = vpack.c.bf16 %v243_v12, %v242_v11  ;;  %v685_v12 = vld [vmem:[%s1043_s6] ss:$0 sm:$0xff] }
  0xfd   :  { %v250_v16 = vpack.c.bf16 %v241_v14, %v240_v13 }
  0xff   :  { %776 = vmatprep.mubr.bf16.mxu1 %v250_v16 }
 0x100   :  { %777 = vmatmul.mubr.bf16.gmra.mrb[12].mxu1 %v251_v15 }
 0x1bb   :  { %v766_v20 = vpop.f32.mrb[0].mxu1 }
 0x1bc   :  { %v366_v21 = vadd.f32 %v766_v20, %v668_v19  ;;  %v357_v22 = vpop.f32.mrb[1].mxu1 }
 0x1bd   :  { %v358_v23 = vadd.f32 %v668_v19, %v357_v22  ;;  %v767_v24 = vpop.f32.mrb[2].mxu1 }
 0x1be   :  { %v369_v25 = vadd.f32 %v767_v24, %v668_v19  ;;  %v360_v26 = vpop.f32.mrb[3].mxu1  ;;  %v422_v28 = vmax.f32 %v366_v21, 0.0 }
 0x1bf   :  { %v361_v27 = vadd.f32 %v668_v19, %v360_v26  ;;  %v420_v30 = vmax.f32 %v358_v23, 0.0 }
 0x1c0   :  { %v423_v29 = vmax.f32 %v369_v25, 0.0 }
 0x1c1   :  { %v421_v31 = vmax.f32 %v361_v27, 0.0 }
 0x1c2   :  { %v437_v32 = vpack.c.bf16 %v423_v29, %v422_v28 }
 0x1c3   :  { %v436_v33 = vpack.c.bf16 %v421_v31, %v420_v30  ;;  %v770_v34 = vpop.f32.mrb[4].mxu1 }
 0x1c4   :  { %v382_v35 = vadd.f32 %v770_v34, %v668_v19  ;;  %v373_v36 = vpop.f32.mrb[5].mxu1 }
 0x1c5   :  { %v374_v37 = vadd.f32 %v668_v19, %v373_v36  ;;  %v771_v38 = vpop.f32.mrb[6].mxu1  ;;  %796 = vmatprep.mubr.bf16.mxu0 %v436_v33 }
 0x1c6   :  { %v385_v39 = vadd.f32 %v771_v38, %v668_v19  ;;  %v376_v40 = vpop.f32.mrb[7].mxu1  ;;  %797 = vmatmul.mubr.bf16.vlgmr.msra.gmra.mrb[16].mxu0 %v437_v32  ;;  %v426_v42 = vmax.f32 %v382_v35, 0.0 }
 0x1c7   :  { %v377_v41 = vadd.f32 %v668_v19, %v376_v40  ;;  %v424_v44 = vmax.f32 %v374_v37, 0.0 }
 0x1c8   :  { %v427_v43 = vmax.f32 %v385_v39, 0.0 }
 0x1c9   :  { %v425_v45 = vmax.f32 %v377_v41, 0.0 }
 0x1ca   :  { %v439_v46 = vpack.c.bf16 %v427_v43, %v426_v42 }
 0x1cb   :  { %v438_v47 = vpack.c.bf16 %v425_v45, %v424_v44  ;;  %v774_v48 = vpop.f32.mrb[8].mxu1 }
 0x1cc   :  { %v398_v49 = vadd.f32 %v774_v48, %v668_v19  ;;  %v389_v50 = vpop.f32.mrb[9].mxu1 }
 0x1cd   :  { %v390_v51 = vadd.f32 %v668_v19, %v389_v50  ;;  %v775_v52 = vpop.f32.mrb[10].mxu1  ;;  %800 = vmatprep.mubr.bf16.mxu0 %v438_v47 }
 0x1ce   :  { %v401_v53 = vadd.f32 %v775_v52, %v668_v19  ;;  %v392_v54 = vpop.f32.mrb[11].mxu1  ;;  %801 = vmatmul.mubr.bf16.gmra.mrb[20].mxu0 %v439_v46  ;;  %v430_v56 = vmax.f32 %v398_v49, 0.0 }
 0x1cf   :  { %v393_v55 = vadd.f32 %v668_v19, %v392_v54  ;;  %v428_v58 = vmax.f32 %v390_v51, 0.0 }
 0x1d0   :  { %v431_v57 = vmax.f32 %v401_v53, 0.0 }
 0x1d1   :  { %v429_v59 = vmax.f32 %v393_v55, 0.0 }
 0x1d2   :  { %v441_v60 = vpack.c.bf16 %v431_v57, %v430_v56 }
 0x1d3   :  { %v440_v61 = vpack.c.bf16 %v429_v59, %v428_v58  ;;  %v778_v62 = vpop.f32.mrb[12].mxu1 }
 0x1d4   :  { %v414_v63 = vadd.f32 %v778_v62, %v668_v19  ;;  %v405_v0 = vpop.f32.mrb[13].mxu1 }
 0x1d5   :  { %v406_v1 = vadd.f32 %v668_v19, %v405_v0  ;;  %v779_v2 = vpop.f32.mrb[14].mxu1  ;;  %804 = vmatprep.mubr.bf16.mxu0 %v440_v61 }
 0x1d6   :  { %v417_v3 = vadd.f32 %v779_v2, %v668_v19  ;;  %v408_v4 = vpop.f32.mrb[15].mxu1  ;;  %805 = vmatmul.mubr.bf16.gmra.mrb[24].mxu0 %v441_v60  ;;  %v434_v6 = vmax.f32 %v414_v63, 0.0 }
 0x1d7   :  { %v409_v5 = vadd.f32 %v668_v19, %v408_v4  ;;  %v432_v8 = vmax.f32 %v406_v1, 0.0 }
 0x1d8   :  { %v435_v7 = vmax.f32 %v417_v3, 0.0 }
 0x1d9   :  { %v433_v9 = vmax.f32 %v409_v5, 0.0 }
 0x1da   :  { %v443_v10 = vpack.c.bf16 %v435_v7, %v434_v6 }
 0x1db   :  { %v442_v11 = vpack.c.bf16 %v433_v9, %v432_v8 }
 0x1dd   :  { %808 = vmatprep.mubr.bf16.mxu0 %v442_v11 }
 0x1de   :  { %809 = vmatmul.mubr.bf16.gmra.mrb[28].mxu0 %v443_v10 }
 0x299   :  { %v798_v13 = vpop.f32.mrb[16].mxu0 }
 0x29a   :  { %v614_v14 = vadd.f32 %v798_v13, %v685_v12  ;;  %v542_v15 = vpop.f32.mrb[17].mxu0 }
 0x29b   :  { %v612_v16 = vadd.f32 %v685_v12, %v542_v15  ;;  %v799_v17 = vpop.f32.mrb[18].mxu0 }
 0x29c   :  { %631 = vst.msk [vmem:[%s1044_s7 + $0x10] sm:$0xff] %vm628_vm1, %v614_v14  ;;  %v615_v18 = vadd.f32 %v799_v17, %v685_v12  ;;  %v545_v19 = vpop.f32.mrb[19].mxu0 }
 0x29d   :  { %629 = vst.msk [vmem:[%s1044_s7] sm:$0xff] %vm628_vm1, %v612_v16  ;;  %v613_v20 = vadd.f32 %v685_v12, %v545_v19 }
 0x29e   :  { %632 = vst.msk [vmem:[%s1044_s7 + $0x18] sm:$0xff] %vm628_vm1, %v615_v18 }
 0x29f   :  { %630 = vst.msk [vmem:[%s1044_s7 + $0x8] sm:$0xff] %vm628_vm1, %v613_v20 }
 0x2a1   :  { %v802_v21 = vpop.f32.mrb[20].mxu0 }
 0x2a2   :  { %v618_v22 = vadd.f32 %v802_v21, %v685_v12  ;;  %v558_v23 = vpop.f32.mrb[21].mxu0 }
 0x2a3   :  { %v616_v24 = vadd.f32 %v685_v12, %v558_v23  ;;  %v803_v25 = vpop.f32.mrb[22].mxu0 }
 0x2a4   :  { %635 = vst.msk [vmem:[%s1044_s7 + $0x30] sm:$0xff] %vm628_vm1, %v618_v22  ;;  %v619_v26 = vadd.f32 %v803_v25, %v685_v12  ;;  %v561_v27 = vpop.f32.mrb[23].mxu0 }
 0x2a5   :  { %633 = vst.msk [vmem:[%s1044_s7 + $0x20] sm:$0xff] %vm628_vm1, %v616_v24  ;;  %v617_v28 = vadd.f32 %v685_v12, %v561_v27 }
 0x2a6   :  { %636 = vst.msk [vmem:[%s1044_s7 + $0x38] sm:$0xff] %vm628_vm1, %v619_v26 }
 0x2a7   :  { %634 = vst.msk [vmem:[%s1044_s7 + $0x28] sm:$0xff] %vm628_vm1, %v617_v28 }
 0x2a9   :  { %v806_v29 = vpop.f32.mrb[24].mxu0 }
 0x2aa   :  { %v622_v30 = vadd.f32 %v806_v29, %v685_v12  ;;  %v574_v31 = vpop.f32.mrb[25].mxu0 }
 0x2ab   :  { %v620_v32 = vadd.f32 %v685_v12, %v574_v31  ;;  %v807_v33 = vpop.f32.mrb[26].mxu0 }
 0x2ac   :  { %639 = vst.msk [vmem:[%s1044_s7 + $0x50] sm:$0xff] %vm628_vm1, %v622_v30  ;;  %v623_v34 = vadd.f32 %v807_v33, %v685_v12  ;;  %v577_v35 = vpop.f32.mrb[27].mxu0 }
 0x2ad   :  { %637 = vst.msk [vmem:[%s1044_s7 + $0x40] sm:$0xff] %vm628_vm1, %v620_v32  ;;  %v621_v36 = vadd.f32 %v685_v12, %v577_v35 }
 0x2ae   :  { %640 = vst.msk [vmem:[%s1044_s7 + $0x58] sm:$0xff] %vm628_vm1, %v623_v34 }
 0x2af   :  { %638 = vst.msk [vmem:[%s1044_s7 + $0x48] sm:$0xff] %vm628_vm1, %v621_v36 }
 0x2b1   :  { %v810_v37 = vpop.f32.mrb[28].mxu0 }
 0x2b2   :  { %v626_v38 = vadd.f32 %v810_v37, %v685_v12  ;;  %v590_v39 = vpop.f32.mrb[29].mxu0 }
 0x2b3   :  { %v624_v40 = vadd.f32 %v685_v12, %v590_v39  ;;  %v811_v41 = vpop.f32.mrb[30].mxu0 }
 0x2b4   :  { %643 = vst.msk [vmem:[%s1044_s7 + $0x70] sm:$0xff] %vm628_vm1, %v626_v38  ;;  %v627_v42 = vadd.f32 %v811_v41, %v685_v12  ;;  %v593_v43 = vpop.f32.mrb[31].mxu0 }
 0x2b5   :  { %641 = vst.msk [vmem:[%s1044_s7 + $0x60] sm:$0xff] %vm628_vm1, %v624_v40  ;;  %v625_v44 = vadd.f32 %v685_v12, %v593_v43 }
 0x2b6   :  { %644 = vst.msk [vmem:[%s1044_s7 + $0x78] sm:$0xff] %vm628_vm1, %v627_v42 }
 0x2b7   :  { %642 = vst.msk [vmem:[%s1044_s7 + $0x68] sm:$0xff] %vm628_vm1, %v625_v44 }

</bundles_post_ra>
